<compile_context>
chip_gen: v7x
topology: tpu7x:2x2x1
jax: 0.10.0
libtpu: 0.0.40
codegen_flags: <defaults>
</compile_context>

<pallas_src>
import functools

import jax
import jax.numpy as jnp
from jax.experimental import pallas as pl
from jax.experimental.pallas import tpu as pltpu

_LANE = 128
_UNROLL_MAX_CHUNKS = 16   # fully unroll the vocab-chunk loop below this many chunks


def _sampling_kernel(logits_ref, u_ref, tri_ref, out_ref,
                     m_ref, s_ref, pfx_ref, cnt_ref,
                     *, inv_temp, num_chunks, chunk, vocab):
    """One grid step samples one tile of rows (flattened batch*length).

    logits_ref: (TR, Vp)  input dtype (f32 or bf16), vocab on lanes
    u_ref:      (TR, 1)   f32 uniforms in [0, 1)
    tri_ref:    (chunk, chunk) bf16 inclusive upper-triangular ones (constant)
    out_ref:    (TR, 1)   int32 sampled indices
    m/s/pfx/cnt_ref: (TR, 1) f32 per-row state scratch
    """
    rows = logits_ref.shape[0]

    def chunk_slice(c):
        if isinstance(c, int):                 # unrolled path: static slice
            start = c * chunk
        else:                                  # dynamic path: 128-aligned start
            start = pl.multiple_of(c * chunk, chunk)
        return logits_ref[:, pl.ds(start, chunk)].astype(jnp.float32) * inv_temp

    def run_chunk_loop(body):
        if num_chunks <= _UNROLL_MAX_CHUNKS:
            for c in range(num_chunks):        # static, LLO-visible
                body(c)
        else:
            @pl.loop(0, num_chunks)
            def _(c):
                body(c)

    # ---- init per-row state (scratch persists across grid steps)
    m_ref[...] = jnp.full((rows, 1), -jnp.inf, dtype=jnp.float32)
    s_ref[...] = jnp.zeros((rows, 1), dtype=jnp.float32)

    # ---- pass 1: online (flash-style) row max and sum of exp(logits/T - max)
    def pass1(c):
        xc = chunk_slice(c)                                        # (TR, chunk) f32
        m_old = m_ref[...]
        m_new = jnp.maximum(m_old, jnp.max(xc, axis=-1, keepdims=True))
        s_ref[...] = (s_ref[...] * jnp.exp(m_old - m_new)
                      + jnp.sum(jnp.exp(xc - m_new), axis=-1, keepdims=True))
        m_ref[...] = m_new
    run_chunk_loop(pass1)

    # ---- threshold t = u * sum(e): compare the *unnormalized* CDF against t
    # (cumsum(e)/s < u  <=>  cumsum(e) < u*s), removing the per-element divide.
    # Clamp u away from 0 so zero-probability tokens are never returned.
    tiny = jnp.float32(jnp.finfo(jnp.float32).tiny)
    s_ref[...] = jnp.maximum(u_ref[...], tiny) * s_ref[...]        # s_ref now holds t

    pfx_ref[...] = jnp.zeros((rows, 1), dtype=jnp.float32)
    cnt_ref[...] = jnp.zeros((rows, 1), dtype=jnp.float32)

    # ---- pass 2: chunked inverse-CDF count.
    def pass2(c):
        xc = chunk_slice(c)
        ec = jnp.exp(xc - m_ref[...])                              # (TR, chunk) f32
        # per-chunk inclusive prefix sum on the MXU: bf16 operands (tri is
        # exactly representable), f32 accumulation.
        ccdf = jnp.dot(ec.astype(jnp.bfloat16), tri_ref[...],
                       preferred_element_type=jnp.float32)         # (TR, chunk)
        cdf = ccdf + pfx_ref[...]
        below = (cdf < s_ref[...]).astype(jnp.float32)
        cnt_ref[...] += jnp.sum(below, axis=-1, keepdims=True)
        pfx_ref[...] += ccdf[:, chunk - 1:chunk]                   # chunk total
    run_chunk_loop(pass2)

    # ---- clamp (fp round-off near cdf ~ 1 and vocab padding) and emit int32
    out_ref[...] = jnp.minimum(cnt_ref[...], vocab - 1).astype(jnp.int32)


def sampling_search_forward(logits: jax.Array,
                            uniforms: jax.Array,
                            temperature: float = 1.0,
                            *, row_tile: int = 128, chunk: int = 128) -> jax.Array:
    """Pallas implementation of SamplingSearch.forward.

    Args:
      logits:   (B, L, V) model logits (f32 or bf16 -- not up-cast in the wrapper).
      uniforms: (B, L) or (B, L, 1) uniform randoms in [0, 1), one per token.
      temperature: softmax temperature (> 0).

    Returns:
      (B, L) int32 sampled token indices.
    """
    if logits.ndim != 3:
        raise ValueError(f"Logits need to be 3D, was: {logits.shape}")
    if temperature <= 0.0:
        raise ValueError("temperature must be > 0")
    if chunk % _LANE != 0:
        raise ValueError("chunk must be a multiple of 128")
    if row_tile % 8 != 0:
        raise ValueError("row_tile must be a multiple of 8")

    B, L, V = logits.shape
    R = B * L

    # Flatten (batch, length) -> rows; keep the input dtype (bf16 stays bf16 in
    # HBM -> half the DMA bytes; chunks are cast to f32 inside the kernel).
    x = logits.reshape(R, V)
    u = uniforms.reshape(R, 1).astype(jnp.float32)

    # Pad vocab up to a multiple of `chunk` so every in-kernel slice is full.
    # Pad value is hugely negative -> exp == 0 -> contributes nothing.
    Vp = chunk * pl.cdiv(V, chunk)
    if Vp != V:
        pad = jnp.full((R, Vp - V), -1e30, dtype=x.dtype)
        x = jnp.concatenate([x, pad], axis=1)
    num_chunks = Vp // chunk

    TR = R if R <= row_tile else row_tile
    grid = (pl.cdiv(R, TR),)

    # Constant inclusive upper-triangular ones (exact in bf16); constant block
    # index -> DMA'd once and kept resident across grid steps.
    tri = jnp.triu(jnp.ones((chunk, chunk), jnp.float32)).astype(jnp.bfloat16)

    kernel = functools.partial(
        _sampling_kernel,
        inv_temp=float(1.0 / temperature),
        num_chunks=int(num_chunks),
        chunk=int(chunk),
        vocab=int(V),
    )

    cost = pl.CostEstimate(
        flops=int(2 * R * Vp * chunk + 10 * R * Vp),
        transcendentals=int(2 * R * Vp),
        bytes_accessed=int(x.size * x.dtype.itemsize + u.size * 4
                           + tri.size * 2 + R * 4),
    )

    # VMEM budget (v7x only has 64 MiB): double-buffered logits tile + resident
    # tri + chunk-sized temporaries + per-row state. Only raise the scoped
    # limit when the estimate demands it.
    vmem_est = (2 * TR * Vp * x.dtype.itemsize
                + chunk * chunk * 2
                + 8 * TR * chunk * 4
                + 32 * TR * 4)
    vmem_limit = int(min(64 * 2**20, 2 * vmem_est)) if vmem_est > 24 * 2**20 else None

    out = pl.pallas_call(
        kernel,
        out_shape=jax.ShapeDtypeStruct((R, 1), jnp.int32),
        grid_spec=pltpu.PrefetchScalarGridSpec(
            num_scalar_prefetch=0,
            grid=grid,
            in_specs=[
                pl.BlockSpec((TR, Vp), lambda r: (r, 0)),        # logits row tile
                pl.BlockSpec((TR, 1), lambda r: (r, 0)),         # uniforms
                pl.BlockSpec((chunk, chunk), lambda r: (0, 0)),  # tri (resident)
            ],
            out_specs=pl.BlockSpec((TR, 1), lambda r: (r, 0)),
            scratch_shapes=[
                pltpu.VMEM((TR, 1), jnp.float32),   # running max
                pltpu.VMEM((TR, 1), jnp.float32),   # sum(exp) -> threshold t
                pltpu.VMEM((TR, 1), jnp.float32),   # running prefix
                pltpu.VMEM((TR, 1), jnp.float32),   # running count
            ],
        ),
        compiler_params=pltpu.CompilerParams(
            dimension_semantics=("parallel",),
            vmem_limit_bytes=vmem_limit,
        ),
        cost_estimate=cost,
    )(x, u, tri)

    # torch: stack -> (B, L, 1), squeeze(-1) -> (B, L)
    # TODO(synk): torch.multinomial returns int64; int32 used here (JAX x32).
    # TODO(synk): output kept (R, 1) + reshape (flash-attention idiom); its
    # masked 1-lane store is negligible vs. the vocab loop.
    return out.reshape(B, L)


if __name__ == "__main__":
    temperature = 0.7

    def ref_cdf(lg):
        p = jax.nn.softmax(lg.astype(jnp.float32) / temperature, axis=-1)
        return jnp.cumsum(p, axis=-1)

    def check(tokens, lg, u, V, tol=1e-2):
        # tokens must be a valid inverse-CDF sample: cdf[j-1] <= u <= cdf[j]
        # up to the bf16-matmul tolerance.
        assert tokens.dtype == jnp.int32, tokens.dtype
        assert bool(jnp.all((tokens >= 0) & (tokens < V)))
        cdf = ref_cdf(lg)                                            # (B, L, V)
        hi = jnp.take_along_axis(cdf, tokens[..., None], axis=-1)[..., 0]
        lo = jnp.where(
            tokens > 0,
            jnp.take_along_axis(cdf, jnp.maximum(tokens - 1, 0)[..., None],
                                axis=-1)[..., 0],
            jnp.float32(0.0))
        ok = (u <= hi + tol) & (u >= lo - tol)
        assert bool(jnp.all(ok))

    key = jax.random.PRNGKey(0)

    # --- test 1: single vocab chunk, single grid step -----------------------
    B, L, V = 2, 8, 32
    k1, k2, key = jax.random.split(key, 3)
    logits = jax.random.normal(k1, (B, L, V), dtype=jnp.float32)
    u = jax.random.uniform(k2, (B, L), dtype=jnp.float32)
    tok = jax.block_until_ready(sampling_search_forward(logits, u, temperature))
    assert tok.shape == (B, L), tok.shape
    check(tok, logits, u, V)

    # --- test 2: multiple vocab chunks + multiple row tiles + padding -------
    B2, L2, V2 = 4, 40, 300          # V pads 300 -> 384 (3 chunks); R=160 -> 2 tiles
    k3, k4, key = jax.random.split(key, 3)
    logits2 = jax.random.normal(k3, (B2, L2, V2), dtype=jnp.float32) * 2.0
    u2 = jax.random.uniform(k4, (B2, L2), dtype=jnp.float32)
    tok2 = jax.block_until_ready(sampling_search_forward(logits2, u2, temperature))
    assert tok2.shape == (B2, L2), tok2.shape
    check(tok2, logits2, u2, V2)

    # --- test 3: bf16 ingest (no wrapper up-cast) ----------------------------
    logits_bf16 = logits.astype(jnp.bfloat16)
    tok3 = jax.block_until_ready(
        sampling_search_forward(logits_bf16, u, temperature))
    assert tok3.shape == (B, L), tok3.shape
    check(tok3, logits_bf16.astype(jnp.float32), u, V)

    print("KERNEL_OK")
</pallas_src>

<mosaic_0001>
module attributes {stable_mosaic.version = 11 : i64} {
  func.func @_sampling_kernel(%arg0: i32, %arg1: memref<16x128xf32, #tpu.memory_space<vmem>>, %arg2: memref<16x1xf32, #tpu.memory_space<vmem>>, %arg3: memref<128x128xbf16, #tpu.memory_space<vmem>>, %arg4: memref<16x1xi32, #tpu.memory_space<vmem>>, %arg5: memref<16x1xf32, #tpu.memory_space<vmem>>, %arg6: memref<16x1xf32, #tpu.memory_space<vmem>>, %arg7: memref<16x1xf32, #tpu.memory_space<vmem>>, %arg8: memref<16x1xf32, #tpu.memory_space<vmem>>) attributes {dimension_semantics = [#tpu.dimension_semantics<parallel>], iteration_bounds = array<i64: 1>, scalar_prefetch = 0 : i64, scratch_operands = 4 : i64, tpu.core_type = #tpu.core_type<tc>, window_params = [{transform_indices = @transform_0, window_bounds = array<i64: 16, 128>}, {transform_indices = @transform_1, window_bounds = array<i64: 16, 1>}, {pipeline_mode = #tpu.pipeline_mode<synchronous>, transform_indices = @transform_2, window_bounds = array<i64: 128, 128>}, {transform_indices = @transform_3, window_bounds = array<i64: 16, 1>}]} {
    %cst = arith.constant 0xFF800000 : f32
    %0 = vector.broadcast %cst : f32 to vector<16x1xf32>
    %c0 = arith.constant 0 : index
    %c0_0 = arith.constant 0 : index
    %1 = vector.load %arg5[%c0, %c0_0] : memref<16x1xf32, #tpu.memory_space<vmem>>, vector<16x1xf32>
    tpu.vector_store %arg5[%c0, %c0_0], %0 {strides = array<i32>} : memref<16x1xf32, #tpu.memory_space<vmem>>, vector<16x1xf32>,
    %cst_1 = arith.constant 0.000000e+00 : f32
    %2 = vector.broadcast %cst_1 : f32 to vector<16x1xf32>
    %c0_2 = arith.constant 0 : index
    %c0_3 = arith.constant 0 : index
    %3 = vector.load %arg6[%c0_2, %c0_3] : memref<16x1xf32, #tpu.memory_space<vmem>>, vector<16x1xf32>
    tpu.vector_store %arg6[%c0_2, %c0_3], %2 {strides = array<i32>} : memref<16x1xf32, #tpu.memory_space<vmem>>, vector<16x1xf32>,
    %c0_4 = arith.constant 0 : index
    %c0_5 = arith.constant 0 : index
    %4 = vector.load %arg1[%c0_4, %c0_5] : memref<16x128xf32, #tpu.memory_space<vmem>>, vector<16x128xf32>
    %cst_6 = arith.constant 1.42857146 : f32
    %5 = vector.broadcast %cst_6 : f32 to vector<16x128xf32>
    %6 = arith.mulf %4, %5 : vector<16x128xf32>
    %c0_7 = arith.constant 0 : index
    %c0_8 = arith.constant 0 : index
    %7 = vector.load %arg5[%c0_7, %c0_8] : memref<16x1xf32, #tpu.memory_space<vmem>>, vector<16x1xf32>
    %cst_9 = arith.constant dense<0xFF800000> : vector<16xf32>
    %8 = vector.multi_reduction <maximumf>, %6, %cst_9 [1] : vector<16x128xf32> to vector<16xf32>
    %9 = vector.shape_cast %8 : vector<16xf32> to vector<16x1xf32>
    %10 = arith.maximumf %7, %9 : vector<16x1xf32>
    %c0_10 = arith.constant 0 : index
    %c0_11 = arith.constant 0 : index
    %11 = vector.load %arg6[%c0_10, %c0_11] : memref<16x1xf32, #tpu.memory_space<vmem>>, vector<16x1xf32>
    %12 = arith.subf %7, %10 : vector<16x1xf32>
    %13 = math.exp %12 : vector<16x1xf32>
    %14 = arith.mulf %11, %13 : vector<16x1xf32>
    %15 = vector.broadcast %10 : vector<16x1xf32> to vector<16x128xf32>
    %16 = arith.subf %6, %15 : vector<16x128xf32>
    %17 = math.exp %16 : vector<16x128xf32>
    %cst_12 = arith.constant dense<0.000000e+00> : vector<16xf32>
    %18 = vector.multi_reduction <add>, %17, %cst_12 [1] : vector<16x128xf32> to vector<16xf32>
    %19 = vector.shape_cast %18 : vector<16xf32> to vector<16x1xf32>
    %20 = arith.addf %14, %19 : vector<16x1xf32>
    %c0_13 = arith.constant 0 : index
    %c0_14 = arith.constant 0 : index
    %21 = vector.load %arg6[%c0_13, %c0_14] : memref<16x1xf32, #tpu.memory_space<vmem>>, vector<16x1xf32>
    tpu.vector_store %arg6[%c0_13, %c0_14], %20 {strides = array<i32>} : memref<16x1xf32, #tpu.memory_space<vmem>>, vector<16x1xf32>,
    %c0_15 = arith.constant 0 : index
    %c0_16 = arith.constant 0 : index
    %22 = vector.load %arg5[%c0_15, %c0_16] : memref<16x1xf32, #tpu.memory_space<vmem>>, vector<16x1xf32>
    tpu.vector_store %arg5[%c0_15, %c0_16], %10 {strides = array<i32>} : memref<16x1xf32, #tpu.memory_space<vmem>>, vector<16x1xf32>,
    %c0_17 = arith.constant 0 : index
    %c0_18 = arith.constant 0 : index
    %23 = vector.load %arg2[%c0_17, %c0_18] : memref<16x1xf32, #tpu.memory_space<vmem>>, vector<16x1xf32>
    %cst_19 = arith.constant 1.17549435E-38 : f32
    %24 = vector.broadcast %cst_19 : f32 to vector<16x1xf32>
    %25 = arith.maximumf %23, %24 : vector<16x1xf32>
    %c0_20 = arith.constant 0 : index
    %c0_21 = arith.constant 0 : index
    %26 = vector.load %arg6[%c0_20, %c0_21] : memref<16x1xf32, #tpu.memory_space<vmem>>, vector<16x1xf32>
    %27 = arith.mulf %25, %26 : vector<16x1xf32>
    %c0_22 = arith.constant 0 : index
    %c0_23 = arith.constant 0 : index
    %28 = vector.load %arg6[%c0_22, %c0_23] : memref<16x1xf32, #tpu.memory_space<vmem>>, vector<16x1xf32>
    tpu.vector_store %arg6[%c0_22, %c0_23], %27 {strides = array<i32>} : memref<16x1xf32, #tpu.memory_space<vmem>>, vector<16x1xf32>,
    %cst_24 = arith.constant 0.000000e+00 : f32
    %29 = vector.broadcast %cst_24 : f32 to vector<16x1xf32>
    %c0_25 = arith.constant 0 : index
    %c0_26 = arith.constant 0 : index
    %30 = vector.load %arg7[%c0_25, %c0_26] : memref<16x1xf32, #tpu.memory_space<vmem>>, vector<16x1xf32>
    tpu.vector_store %arg7[%c0_25, %c0_26], %29 {strides = array<i32>} : memref<16x1xf32, #tpu.memory_space<vmem>>, vector<16x1xf32>,
    %cst_27 = arith.constant 0.000000e+00 : f32
    %31 = vector.broadcast %cst_27 : f32 to vector<16x1xf32>
    %c0_28 = arith.constant 0 : index
    %c0_29 = arith.constant 0 : index
    %32 = vector.load %arg8[%c0_28, %c0_29] : memref<16x1xf32, #tpu.memory_space<vmem>>, vector<16x1xf32>
    tpu.vector_store %arg8[%c0_28, %c0_29], %31 {strides = array<i32>} : memref<16x1xf32, #tpu.memory_space<vmem>>, vector<16x1xf32>,
    %c0_30 = arith.constant 0 : index
    %c0_31 = arith.constant 0 : index
    %33 = vector.load %arg1[%c0_30, %c0_31] : memref<16x128xf32, #tpu.memory_space<vmem>>, vector<16x128xf32>
    %cst_32 = arith.constant 1.42857146 : f32
    %34 = vector.broadcast %cst_32 : f32 to vector<16x128xf32>
    %35 = arith.mulf %33, %34 : vector<16x128xf32>
    %c0_33 = arith.constant 0 : index
    %c0_34 = arith.constant 0 : index
    %36 = vector.load %arg5[%c0_33, %c0_34] : memref<16x1xf32, #tpu.memory_space<vmem>>, vector<16x1xf32>
    %37 = vector.broadcast %36 : vector<16x1xf32> to vector<16x128xf32>
    %38 = arith.subf %35, %37 : vector<16x128xf32>
    %39 = math.exp %38 : vector<16x128xf32>
    %40 = arith.truncf %39 : vector<16x128xf32> to vector<16x128xbf16>
    %c0_35 = arith.constant 0 : index
    %c0_36 = arith.constant 0 : index
    %41 = vector.load %arg3[%c0_35, %c0_36] : memref<128x128xbf16, #tpu.memory_space<vmem>>, vector<128x128xbf16>
    %cst_37 = arith.constant dense<0.000000e+00> : vector<16x128xf32>
    %42 = tpu.matmul %40, %41, %cst_37 {dimension_numbers = #tpu.dot_dimension_numbers<[1], [0], [0], [1], [0, 0, 1, 1], [], []>} : vector<16x128xbf16>, vector<128x128xbf16>, vector<16x128xf32> -> vector<16x128xf32>
    %c0_38 = arith.constant 0 : index
    %c0_39 = arith.constant 0 : index
    %43 = vector.load %arg7[%c0_38, %c0_39] : memref<16x1xf32, #tpu.memory_space<vmem>>, vector<16x1xf32>
    %44 = vector.broadcast %43 : vector<16x1xf32> to vector<16x128xf32>
    %45 = arith.addf %42, %44 : vector<16x128xf32>
    %c0_40 = arith.constant 0 : index
    %c0_41 = arith.constant 0 : index
    %46 = vector.load %arg6[%c0_40, %c0_41] : memref<16x1xf32, #tpu.memory_space<vmem>>, vector<16x1xf32>
    %47 = vector.broadcast %46 : vector<16x1xf32> to vector<16x128xf32>
    %48 = arith.cmpf olt, %45, %47 : vector<16x128xf32>
    %49 = arith.extui %48 : vector<16x128xi1> to vector<16x128xi32>
    %50 = arith.sitofp %49 : vector<16x128xi32> to vector<16x128xf32>
    %c0_42 = arith.constant 0 : index
    %c0_43 = arith.constant 0 : index
    %51 = vector.load %arg8[%c0_42, %c0_43] : memref<16x1xf32, #tpu.memory_space<vmem>>, vector<16x1xf32>
    %cst_44 = arith.constant dense<0.000000e+00> : vector<16xf32>
    %52 = vector.multi_reduction <add>, %50, %cst_44 [1] : vector<16x128xf32> to vector<16xf32>
    %53 = vector.shape_cast %52 : vector<16xf32> to vector<16x1xf32>
    %54 = arith.addf %51, %53 : vector<16x1xf32>
    %c0_45 = arith.constant 0 : index
    %c0_46 = arith.constant 0 : index
    %55 = vector.load %arg8[%c0_45, %c0_46] : memref<16x1xf32, #tpu.memory_space<vmem>>, vector<16x1xf32>
    tpu.vector_store %arg8[%c0_45, %c0_46], %54 {strides = array<i32>} : memref<16x1xf32, #tpu.memory_space<vmem>>, vector<16x1xf32>,
    %c0_47 = arith.constant 0 : index
    %c0_48 = arith.constant 0 : index
    %56 = vector.load %arg7[%c0_47, %c0_48] : memref<16x1xf32, #tpu.memory_space<vmem>>, vector<16x1xf32>
    %57 = vector.extract_strided_slice %42 {offsets = [0, 127], sizes = [16, 1], strides = [1, 1]} : vector<16x128xf32> to vector<16x1xf32>
    %58 = arith.addf %56, %57 : vector<16x1xf32>
    %c0_49 = arith.constant 0 : index
    %c0_50 = arith.constant 0 : index
    %59 = vector.load %arg7[%c0_49, %c0_50] : memref<16x1xf32, #tpu.memory_space<vmem>>, vector<16x1xf32>
    tpu.vector_store %arg7[%c0_49, %c0_50], %58 {strides = array<i32>} : memref<16x1xf32, #tpu.memory_space<vmem>>, vector<16x1xf32>,
    %c0_51 = arith.constant 0 : index
    %c0_52 = arith.constant 0 : index
    %60 = vector.load %arg8[%c0_51, %c0_52] : memref<16x1xf32, #tpu.memory_space<vmem>>, vector<16x1xf32>
    %cst_53 = arith.constant 3.100000e+01 : f32
    %61 = vector.broadcast %cst_53 : f32 to vector<16x1xf32>
    %62 = arith.minimumf %60, %61 : vector<16x1xf32>
    %63 = arith.fptosi %62 : vector<16x1xf32> to vector<16x1xi32>
    %c0_54 = arith.constant 0 : index
    %c0_55 = arith.constant 0 : index
    %64 = vector.load %arg4[%c0_54, %c0_55] : memref<16x1xi32, #tpu.memory_space<vmem>>, vector<16x1xi32>
    tpu.vector_store %arg4[%c0_54, %c0_55], %63 {strides = array<i32>} : memref<16x1xi32, #tpu.memory_space<vmem>>, vector<16x1xi32>,
    return
  }
  func.func @transform_0(%arg0: i32) -> (i32, i32) {
    %c0_i32 = arith.constant 0 : i32
    %c0_i32_0 = arith.constant 0 : i32
    return %arg0, %c0_i32 : i32, i32
  }
  func.func @transform_1(%arg0: i32) -> (i32, i32) {
    %c0_i32 = arith.constant 0 : i32
    %c0_i32_0 = arith.constant 0 : i32
    return %arg0, %c0_i32 : i32, i32
  }
  func.func @transform_2(%arg0: i32) -> (i32, i32) {
    %c0_i32 = arith.constant 0 : i32
    %c0_i32_0 = arith.constant 0 : i32
    %c0_i32_1 = arith.constant 0 : i32
    return %c0_i32, %c0_i32_0 : i32, i32
  }
  func.func @transform_3(%arg0: i32) -> (i32, i32) {
    %c0_i32 = arith.constant 0 : i32
    %c0_i32_0 = arith.constant 0 : i32
    return %arg0, %c0_i32 : i32, i32
  }
}

</mosaic_0001>

<bundles_post_ra>
// kernel: tpu_custom_call.1
= control target key start
LH: loop header
LB: loop body
LE: loop exit
PB: predicated region body
PF: predicated region fallthrough
CT: control target
= control target key end

     0   :  { %8 = vsyncpa [#allocation7], 0  ;;  %s390_s12 = smov [#allocation6]   ;;  %s516_s0 = inlined_call_operand.vmem [shape: f32[16,128], index: 0, kind: input, shape index: {}]   ;;  %s517_s1 = inlined_call_operand.vmem [shape: f32[16,1], index: 1, kind: input, shape index: {}]   ;;  %s518_s2 = inlined_call_operand.hbm [shape: bf16[128,128], index: 2, kind: input, shape index: {}]   ;;  %s519_s3 = inlined_call_operand.vmem [shape: s32[16,1], index: 3, kind: output, shape index: {}]  }
   0x1   :  { %s18_s13 = sshll.u32 %s390_s12, 4  ;;  %s366_s16 = scalar_lea.hbm %s518_s2, 1024  ;;  %s19_s13 = int_to_ptr.vmem [resolvable:$true] %s18_s13 }
   0x2   :  { %p367_p0 = scmp.ne.s32.totalorder %s518_s2, %s366_s16  ;;  %p370_p1 = scmp.lt.u32.totalorder %s366_s16, %s518_s2 }
   0x4   :  { %p372_p2 = pnand %p370_p1, %p367_p0 }
   0x6   :  { %375 = shalt.err (!%p372_p2)
}
   0x7   :  { %s376_s21 = scalar_lea.vmem %s19_s13, 1024  ;;  %p381_p4 = scmp.lt.s32.totalorder %s19_s13, %s19_s13 }
   0x8   :  { %p377_p3 = scmp.ne.s32.totalorder %s19_s13, %s376_s21  ;;  %p382_p5 = scmp.lt.s32.totalorder %s376_s21, %s376_s21 }
   0xa   :  { %p383_p6 = por %p382_p5, %p381_p4 }
   0xc   :  { %p384_p7 = pnand %p383_p6, %p377_p3 }
   0xe   :  { %387 = shalt.err (!%p384_p7)
}
   0xf   :  { %s391_s22 = smov 64   ;;  %s392_s23 = smov 4  }
  0x10   :  { %24 = dma.hbm_to_vmem [thread:$0]  %s518_s2, 1024, %s19_s13, [#allocation7], %s391_s22, %s391_s22, %s392_s23  }
  0x11   :  { %388 = dma.done.wait [#allocation7], 1024  }
  0x12   :  { %389 = vsyncadd [#allocation7], 4294966272  ;;  %vm29_vm0 = vcmask 7168   ;;  %v393_v0 = vmov -inf   ;;  %v34_v1 = vld [vmem:[%s516_s0] sm:$0xff]  ;;  %v35_v2 = vld [vmem:[%s516_s0 + $0x8] sm:$0xff] }
  0x13   :  { %30 = vst.msk [vmem:[#allocation2] sm:$0xff] %vm29_vm0, %v393_v0  ;;  %31 = vst.msk [vmem:[#allocation2 + $0x8] sm:$0xff] %vm29_vm0, %v393_v0  ;;  %v438_v3 = vmul.f32 1.4285715, %v34_v1  ;;  %v440_v4 = vmul.f32 1.4285715, %v35_v2 }
  0x14   :  { %v394_v5 = vmov 0   ;;  %v395_v6 = vmov 0.0   ;;  %v346_v7 = vld [vmem:[#allocation6] sm:$0xff]   ;;  %v347_v13 = vld [vmem:[#allocation6 + $0x8] sm:$0xff]   ;;  %v348_v18 = vld [vmem:[#allocation6 + $0x10] sm:$0xff]   ;;  %vm396_vm1 = vmmov 0  }
  0x15   :  { %40 = vmax.xlane.f32.xlu0 %v438_v3  ;;  %344 = vset.pattern.permute.xlu1 %v394_v5  ;;  %92 = vst.msk [vmem:[#allocation4] sm:$0xff] %vm29_vm0, %v395_v6  ;;  %32 = vst.msk [vmem:[#allocation3] sm:$0xff] %vm29_vm0, %v395_v6  ;;  %v349_v20 = vld [vmem:[#allocation6 + $0x18] sm:$0xff]   ;;  %v350_v22 = vld [vmem:[#allocation6 + $0x20] sm:$0xff]  }
  0x16   :  { %345 = vset.pattern.permute.xlu0 %v394_v5  ;;  %33 = vst.msk [vmem:[#allocation3 + $0x8] sm:$0xff] %vm29_vm0, %v395_v6  ;;  %93 = vst.msk [vmem:[#allocation4 + $0x8] sm:$0xff] %vm29_vm0, %v395_v6  ;;  %312 = vmatprep.subr.bf16.mxu0 %v395_v6  ;;  %v351_v23 = vld [vmem:[#allocation6 + $0x28] sm:$0xff]   ;;  %v352_v24 = vld [vmem:[#allocation6 + $0x30] sm:$0xff]  }
  0x17   :  { %94 = vst.msk [vmem:[#allocation5] sm:$0xff] %vm29_vm0, %v395_v6  ;;  %95 = vst.msk [vmem:[#allocation5 + $0x8] sm:$0xff] %vm29_vm0, %v395_v6  ;;  %313 = vmatpush3.bf16.msra.mxu0 %v346_v7  ;;  %328 = vmatprep.mubr.msk.bf16.mxu0 %vm396_vm1, %v395_v6  ;;  %v353_v25 = vld [vmem:[#allocation6 + $0x38] sm:$0xff]   ;;  %v82_v51 = vld [vmem:[%s517_s1] sm:$0xff] }
  0x18   :  { %314 = vmatprep.subr.bf16.mxu0 %v395_v6  ;;  %v84_v52 = vmax.f32 %v82_v51, 1.1754944e-38  ;;  %v83_v60 = vld [vmem:[%s517_s1 + $0x8] sm:$0xff]  ;;  %s397_s1 = smov 1  }
  0x19   :  { %42 = vmax.xlane.f32.xlu0 %v440_v4  ;;  %v85_v62 = vmax.f32 %v83_v60, 1.1754944e-38 }
  0x1a   :  { %v458_v8 = vld [vmem:[#allocation2] sm:$0xff]  ;;  %v463_v11 = vld [vmem:[#allocation2 + $0x8] sm:$0xff] }
  0x1b   :  { %315 = vmatpush3.bf16.msra.mxu0 %v347_v13 }
  0x1c   :  { %v470_v15 = vld [vmem:[#allocation4] sm:$0xff]  ;;  %316 = vmatprep.subr.bf16.mxu0 %v395_v6  ;;  %v46_v46 = vld [vmem:[#allocation3] sm:$0xff] }
  0x1d   :  { %v487_v43 = vld [vmem:[#allocation4 + $0x8] sm:$0xff]  ;;  %v47_v56 = vld [vmem:[#allocation3 + $0x8] sm:$0xff] }
  0x1f   :  { %317 = vmatpush3.bf16.msra.mxu0 %v348_v18 }
  0x20   :  { %318 = vmatprep.subr.bf16.mxu0 %v395_v6 }
  0x23   :  { %319 = vmatpush3.bf16.msra.mxu0 %v349_v20 }
  0x24   :  { %320 = vmatprep.subr.bf16.mxu0 %v395_v6 }
  0x27   :  { %321 = vmatpush3.bf16.msra.mxu0 %v350_v22 }
  0x28   :  { %322 = vmatprep.subr.bf16.mxu0 %v395_v6 }
  0x2b   :  { %323 = vmatpush3.bf16.msra.mxu0 %v351_v23 }
  0x2c   :  { %324 = vmatprep.subr.bf16.mxu0 %v395_v6 }
  0x2f   :  { %325 = vmatpush3.bf16.msra.mxu0 %v352_v24  ;;  %v257_v24 = vld [vmem:[#allocation5 + $0x8] sm:$0xff] }
  0x30   :  { %326 = vmatprep.subr.bf16.mxu0 %v395_v6 }
  0x33   :  { %327 = vmatpush3.bf16.msra.mxu0 %v353_v25 }
  0xa2   :  { %v41_v9 = vpop.xlane.xlu0 %40 }
  0xa3   :  { %v461_v10 = vmax.f32 %v458_v8, %v41_v9 }
  0xa5   :  { %v48_v12 = vsub.f32 %v458_v8, %v461_v10  ;;  %80 = vst.msk [vmem:[#allocation2] sm:$0xff] %vm29_vm0, %v461_v10  ;;  %58 = vperm.xlu0 %345, %v461_v10  }
  0xa6   :  { %v43_v14 = vpop.xlane.xlu0 %42 }
  0xa7   :  { %v45_v16 = vmax.f32 %v463_v11, %v43_v14  ;;  %v50_v44 = vmul.f32 1.442695, %v48_v12 }
  0xa9   :  { %v49_v17 = vsub.f32 %v463_v11, %v45_v16  ;;  %81 = vst.msk [vmem:[#allocation2 + $0x8] sm:$0xff] %vm29_vm0, %v45_v16  ;;  %228 = vperm.xlu0 %345, %v470_v15  }
  0xab   :  { %v52_v47 = vmul.f32 1.442695, %v49_v17 }
  0xac   :  { %v100_v19 = vld [vmem:[#allocation2] sm:$0xff] }
  0xad   :  { %104 = vperm.xlu1 %344, %v100_v19  }
  0xb0   :  { %v101_v21 = vld [vmem:[#allocation2 + $0x8] sm:$0xff] }
  0xb1   :  { %109 = vperm.xlu1 %344, %v101_v21  }
  0xb5   :  { %63 = vperm.xlu1 %344, %v45_v16   ;;  %v256_v16 = vld [vmem:[#allocation5] sm:$0xff] }
 0x124   :  { %v59_v26 = vpop.permute.xlu0 %58 }
 0x125   :  { %v66_v27 = vsub.f32 %v438_v3, %v59_v26 }
 0x127   :  { %v68_v28 = vmul.f32 1.442695, %v66_v27 }
 0x128   :  { %v229_v7 = vpop.permute.xlu0 %228 }
 0x129   :  { %354 = vpow2.f32 %v68_v28 }
 0x12c   :  { %v105_v29 = vpop.permute.xlu1 %104 }
 0x12d   :  { %v112_v30 = vsub.f32 %v438_v3, %v105_v29 }
 0x12f   :  { %v114_v31 = vmul.f32 1.442695, %v112_v30 }
 0x130   :  { %v110_v32 = vpop.permute.xlu1 %109 }
 0x131   :  { %v113_v33 = vsub.f32 %v440_v4, %v110_v32  ;;  %356 = vpow2.f32 %v114_v31 }
 0x133   :  { %v355_v34 = vpop.eup %354  ;;  %v116_v35 = vmul.f32 1.442695, %v113_v33 }
 0x134   :  { %72 = vadd.xlane.f32.xlu1 %v355_v34  ;;  %v64_v36 = vpop.permute.xlu1 %63 }
 0x135   :  { %358 = vpow2.f32 %v116_v35  ;;  %v67_v37 = vsub.f32 %v440_v4, %v64_v36 }
 0x137   :  { %v70_v38 = vmul.f32 1.442695, %v67_v37 }
 0x139   :  { %360 = vpow2.f32 %v70_v38 }
 0x13a   :  { %362 = vpow2.f32 %v50_v44 }
 0x13b   :  { %v357_v39 = vpop.eup %356  ;;  %364 = vpow2.f32 %v52_v47 }
 0x13f   :  { %v359_v40 = vpop.eup %358 }
 0x140   :  { %v118_v41 = vpack.c.bf16 %v359_v40, %v357_v39 }
 0x142   :  { %329 = vmatmul.mubr.bf16.vlgmr.msra.gmra.mrb[0].mxu0 %v118_v41 }
 0x143   :  { %v361_v42 = vpop.eup %360 }
 0x144   :  { %74 = vadd.xlane.f32.xlu1 %v361_v42  ;;  %v363_v45 = vpop.eup %362 }
 0x145   :  { %v54_v48 = vmul.f32 %v363_v45, %v46_v46  ;;  %v365_v55 = vpop.eup %364 }
 0x146   :  { %v55_v57 = vmul.f32 %v365_v55, %v47_v56 }
 0x155   :  { %233 = vperm.xlu1 %344, %v487_v43  }
 0x1c1   :  { %v73_v49 = vpop.xlane.xlu1 %72 }
 0x1c2   :  { %v76_v50 = vadd.f32 %v73_v49, %v54_v48 }
 0x1c4   :  { %78 = vst.msk [vmem:[#allocation3] sm:$0xff] %vm29_vm0, %v76_v50 }
 0x1cb   :  { %v86_v53 = vld [vmem:[#allocation3] sm:$0xff] }
 0x1cc   :  { %v88_v54 = vmul.f32 %v86_v53, %v84_v52 }
 0x1ce   :  { %90 = vst.msk [vmem:[#allocation3] sm:$0xff] %vm29_vm0, %v88_v54 }
 0x1d1   :  { %v75_v58 = vpop.xlane.xlu1 %74 }
 0x1d2   :  { %v77_v59 = vadd.f32 %v75_v58, %v55_v57 }
 0x1d4   :  { %79 = vst.msk [vmem:[#allocation3 + $0x8] sm:$0xff] %vm29_vm0, %v77_v59 }
 0x1d5   :  { %v238_v61 = vld [vmem:[#allocation3] sm:$0xff]  ;;  %v234_v11 = vpop.permute.xlu1 %233 }
 0x1d6   :  { %242 = vperm.xlu0 %345, %v238_v61  }
 0x1db   :  { %v87_v63 = vld [vmem:[#allocation3 + $0x8] sm:$0xff] }
 0x1dc   :  { %v89_v0 = vmul.f32 %v87_v63, %v85_v62 }
 0x1de   :  { %91 = vst.msk [vmem:[#allocation3 + $0x8] sm:$0xff] %vm29_vm0, %v89_v0 }
 0x1e5   :  { %v239_v1 = vld [vmem:[#allocation3 + $0x8] sm:$0xff] }
 0x1e6   :  { %247 = vperm.xlu0 %345, %v239_v1  }
 0x215   :  { %v217_v2 = vpop.f32.mrb[0].mxu0 }
 0x216   :  { %v330_v3 = vpop.f32.mrb[1].mxu0  ;;  %v236_v8 = vadd.f32 %v229_v7, %v217_v2 }
 0x217   :  { %v220_v4 = vpop.f32.mrb[2].mxu0 }
 0x218   :  { %v331_v5 = vpop.f32.mrb[3].mxu0  ;;  %v237_v12 = vadd.f32 %v234_v11, %v220_v4 }
 0x255   :  { %v243_v9 = vpop.permute.xlu0 %242 }
 0x256   :  { %vm250_vm2 = vcmp.lt.f32.partialorder %v236_v8, %v243_v9 }
 0x257   :  { %v301_v10 = vsel %vm250_vm2, 1.0, %v395_v6 }
 0x258   :  { %258 = vadd.xlane.f32.xlu0 %v301_v10 }
 0x265   :  { %v248_v13 = vpop.permute.xlu0 %247 }
 0x266   :  { %vm251_vm3 = vcmp.lt.f32.partialorder %v237_v12, %v248_v13 }
 0x267   :  { %v302_v14 = vsel %vm251_vm3, 1.0, %v395_v6 }
 0x268   :  { %260 = vadd.xlane.f32.xlu1 %v302_v14 }
 0x26e   :  { %270 = vrot.lane.b32.xlu0 %v217_v2, %s397_s1 }
 0x279   :  { %272 = vrot.lane.b32.xlu1 %v220_v4, %s397_s1 }
 0x2e5   :  { %v259_v17 = vpop.xlane.xlu0 %258 }
 0x2e6   :  { %v262_v18 = vadd.f32 %v259_v17, %v256_v16 }
 0x2e8   :  { %264 = vst.msk [vmem:[#allocation5] sm:$0xff] %vm29_vm0, %v262_v18 }
 0x2e9   :  { %v271_v19 = vpop.permute.xlu0 %270 }
 0x2ea   :  { %v276_v20 = vadd.f32 %v271_v19, %v470_v15 }
 0x2ec   :  { %278 = vst.msk [vmem:[#allocation4] sm:$0xff] %vm29_vm0, %v276_v20 }
 0x2ef   :  { %v280_v21 = vld [vmem:[#allocation5] sm:$0xff] }
 0x2f0   :  { %v282_v22 = vmin.f32 %v280_v21, 31.0 }
 0x2f2   :  { %v332_v23 = vtrunc.f32 %v282_v22 }
 0x2f4   :  { %v333_v25 = vcvt.f32.s32 %v332_v23 }
 0x2f5   :  { %v261_v6 = vpop.xlane.xlu1 %260 }
 0x2f6   :  { %286 = vst.msk [vmem:[%s519_s3] sm:$0xff] %vm29_vm0, %v333_v25  ;;  %v263_v26 = vadd.f32 %v261_v6, %v257_v24 }
 0x2f8   :  { %265 = vst.msk [vmem:[#allocation5 + $0x8] sm:$0xff] %vm29_vm0, %v263_v26 }
 0x2f9   :  { %v273_v27 = vpop.permute.xlu1 %272 }
 0x2fa   :  { %v277_v28 = vadd.f32 %v273_v27, %v487_v43 }
 0x2fc   :  { %279 = vst.msk [vmem:[#allocation4 + $0x8] sm:$0xff] %vm29_vm0, %v277_v28 }
 0x2ff   :  { %v281_v15 = vld [vmem:[#allocation5 + $0x8] sm:$0xff] }
 0x300   :  { %v283_v29 = vmin.f32 %v281_v15, 31.0 }
 0x302   :  { %v334_v30 = vtrunc.f32 %v283_v29 }
 0x304   :  { %v335_v31 = vcvt.f32.s32 %v334_v30 }
 0x306   :  { %287 = vst.msk [vmem:[%s519_s3 + $0x8] sm:$0xff] %vm29_vm0, %v335_v31 }
 0x307   :  { %292 = vsyncpa [#allocation7], 1 }

</bundles_post_ra>
